<compile_context>
chip_gen: v7x
topology: tpu7x:2x2x1
jax: 0.10.0
libtpu: 0.0.40
codegen_flags: <defaults>
</compile_context>

<pallas_src>
import functools

import jax
import jax.numpy as jnp
from jax.experimental import pallas as pl
from jax.experimental.pallas import tpu as pltpu


_VMEM_BUDGET_CAP = 48 * 1024 * 1024   # never budget more than this for tiles


def _vmem_capacity_bytes():
    """Per-TensorCore VMEM capacity; conservative (v7x-sized) fallback."""
    try:
        info = pltpu.get_tpu_info()
        cap = int(getattr(info, "vmem_capacity_bytes", 0) or 0)
        if cap > 0:
            return cap
    except Exception:
        pass
    return 64 * 1024 * 1024


def _num_tensorcores():
    """2 for megacore / multi-TC chips (v4, v5p, v7x); 1 for v5e/v6e."""
    try:
        kind = jax.devices()[0].device_kind.lower()
    except Exception:
        return 1
    return 2 if ("v7" in kind or "v4" in kind or "v5p" in kind) else 1


def _plan_tiles(n_batch, spatial, c_in, n_out, in_itemsize, out_itemsize):
    """Pick (tnout, tm) tile sizes and a VMEM limit for the matmul grid."""
    capacity = _vmem_capacity_bytes()
    budget = min(_VMEM_BUDGET_CAP, capacity // 2)
    max_tm = 1024 if capacity <= (64 << 20) else 2048   # >=512 already ~85% of roofline

    def vmem_need(tn, tm):
        # Default pipelining double-buffers every operand (the resident weight is only
        # DMA'd once, but both buffers are still allocated) -> 2x everything.
        return 2 * (tn * c_in * in_itemsize        # weight tile
                    + c_in * tm * in_itemsize      # x tile
                    + tn * tm * out_itemsize)      # out tile

    # --- Nout tiling: shrink the row tile until a 512-lane tile fits the budget. ---
    tnout = n_out
    probe_tm = min(512, max_tm)
    while tnout > 8 and vmem_need(tnout, probe_tm) > budget:
        tnout = max(8, ((tnout // 2 + 7) // 8) * 8)    # keep a multiple of 8 (sublanes)

    # --- Largest lane tile that fits the remaining budget. ---
    avail = budget - 2 * tnout * c_in * in_itemsize
    per_tm = 2 * (c_in * in_itemsize + tnout * out_itemsize)
    tm = max(128, (avail // per_tm // 128) * 128) if avail > 0 else 128
    tm = min(tm, max_tm)
    if spatial <= 128:
        tm = spatial                                    # block == full dim is always legal
    else:
        tm = min(tm, (spatial // 128) * 128)            # never exceed the spatial extent

    # --- Megacore occupancy: only shrink tm on multi-TC chips, and only if it helps. ---
    num_tc = _num_tensorcores()
    if num_tc > 1 and spatial > 128:
        while (n_batch * pl.cdiv(n_out, tnout) * pl.cdiv(spatial, tm)) < 4 * num_tc and tm > 128:
            new_tm = max(128, ((tm // 2) // 128) * 128)
            if new_tm == tm:
                break
            tm = new_tm

    need = vmem_need(tnout, tm)
    vmem_limit = int(min(max(capacity - (8 << 20), 16 << 20),
                         max(need + (8 << 20), budget)))
    return int(tnout), int(tm), vmem_limit


def _tconv_matmul_kernel(w_ref, x_ref, o_ref):
    # w_ref: (tnout, Cin)  weight tile, rows ordered co*k^3 + kd*k^2 + kh*k + kw (resident per j)
    # x_ref: (Cin, tm)     lane-dense spatial tile of one batch element
    # o_ref: (tnout, tm)   lane-dense output tile (single unmasked store)
    o_ref[...] = jnp.dot(
        w_ref[...], x_ref[...], preferred_element_type=jnp.float32
    ).astype(o_ref.dtype)


@functools.partial(jax.jit, static_argnames=("out_dtype",))
def tconv3d_forward(x, weight, out_dtype=None):
    """ConvTranspose3d(kernel_size=2, stride=2, bias=False) forward.

    Args:
      x:      (N, Cin, D, H, W)        NCDHW (PyTorch convention).  The matmul runs in
              x.dtype (pass bf16 from the producer to halve the x read stream; the f32
              accumulation is kept either way).  x is never re-cast outside the kernel.
      weight: (Cin, Cout, k, k, k)     PyTorch ConvTranspose3d layout; k == stride.
      out_dtype: result dtype (default x.dtype).  bfloat16 halves the dominant
              output-write stream and the remaining interleave pass.
    Returns:
      (N, Cout, k*D, k*H, k*W)
    """
    N, Cin, D, H, W = x.shape
    Cout = weight.shape[1]
    k = weight.shape[2]                    # kernel_size == stride (2 for this module)
    S = D * H * W
    Nout = Cout * k * k * k

    if out_dtype is None:
        out_dtype = x.dtype

    # Free reshape (no transpose of x): lane axis = flattened spatial.
    x3 = x.reshape(N, Cin, S)
    # Tiny (Cout*k^3, Cin) weight; cast to x.dtype (negligible bytes).
    wT = weight.reshape(Cin, Nout).T.astype(x.dtype)

    in_itemsize = jnp.dtype(x.dtype).itemsize
    out_itemsize = jnp.dtype(out_dtype).itemsize
    tnout, tm, vmem_limit = _plan_tiles(N, S, Cin, Nout, in_itemsize, out_itemsize)

    n_j = pl.cdiv(Nout, tnout)
    grid = (N, n_j, pl.cdiv(S, tm))        # j before s: weight stays resident per j;
                                           # x is re-read n_j times (n_j == 1 normally).

    cost = pl.CostEstimate(
        flops=2 * N * S * Cin * Nout,
        transcendentals=0,
        bytes_accessed=(n_j * N * S * Cin * in_itemsize
                        + Nout * Cin * in_itemsize
                        + N * S * Nout * out_itemsize),
    )

    out3 = pl.pallas_call(
        _tconv_matmul_kernel,
        out_shape=jax.ShapeDtypeStruct((N, Nout, S), out_dtype),
        grid_spec=pltpu.PrefetchScalarGridSpec(
            num_scalar_prefetch=0,
            grid=grid,
            in_specs=[
                pl.BlockSpec((tnout, Cin), lambda n, j, s: (j, 0)),              # weight
                pl.BlockSpec((pl.Squeezed(), Cin, tm), lambda n, j, s: (n, 0, s)),  # x tile
            ],
            out_specs=pl.BlockSpec((pl.Squeezed(), tnout, tm),
                                   lambda n, j, s: (n, j, s)),
        ),
        compiler_params=pltpu.CompilerParams(
            dimension_semantics=("parallel", "parallel", "parallel"),
            vmem_limit_bytes=vmem_limit,
        ),
        cost_estimate=cost,
    )(wT, x3)

    # --- layout glue: interleave the k^3 taps into the upsampled output ---
    # out3[n, co*k^3 + kd*k^2 + kh*k + kw, d*H*W + h*W + w] -> out[n, co, k*d+kd, k*h+kh, k*w+kw]
    # TODO(synk): fold this stride-k tap interleave into the kernel (needs lane/sublane
    # interleaving stores); for now it is one XLA transpose pass, halved by bf16 out_dtype.
    out = out3.reshape(N, Cout, k, k, k, D, H, W)
    out = jnp.transpose(out, (0, 1, 5, 2, 6, 3, 7, 4))
    out = out.reshape(N, Cout, D * k, H * k, W * k)
    return out


if __name__ == "__main__":
    # Small shapes consistent with a 3D ConvTranspose building block: (N, Cin, D, H, W)
    N, Cin, Cout = 2, 4, 8
    D, H, W = 4, 8, 8

    key = jax.random.PRNGKey(0)
    kx, kw = jax.random.split(key)
    x = jax.random.normal(kx, (N, Cin, D, H, W), dtype=jnp.float32)
    # PyTorch weight layout (Cin, Cout, kD, kH, kW)
    weight = jax.random.normal(kw, (Cin, Cout, 2, 2, 2), dtype=jnp.float32) * 0.1

    # Pure-XLA reference (same math, no Pallas).
    ref = jnp.einsum("ncdhw,cokpq->nodkhpwq", x, weight)
    ref = ref.reshape(N, Cout, D * 2, H * 2, W * 2)

    # Default f32 path -- matches the PyTorch module's precision.
    out = jax.block_until_ready(tconv3d_forward(x, weight))
    assert out.shape == (N, Cout, 2 * D, 2 * H, 2 * W), out.shape
    assert jnp.allclose(out, ref, atol=1e-5, rtol=1e-5), float(jnp.max(jnp.abs(out - ref)))

    # bf16 producer path: x arrives in bf16 (no extra cast pass is added by the wrapper),
    # matmul operands bf16, f32 accumulation, bf16 output (default out_dtype = x.dtype).
    x_bf16 = x.astype(jnp.bfloat16)
    out_bf16 = jax.block_until_ready(tconv3d_forward(x_bf16, weight))
    assert out_bf16.dtype == jnp.bfloat16
    err = float(jnp.max(jnp.abs(out_bf16.astype(jnp.float32) - ref)))
    assert jnp.allclose(out_bf16.astype(jnp.float32), ref, atol=5e-2, rtol=5e-2), err

    print("KERNEL_OK")
</pallas_src>

<mosaic_0001>
module attributes {stable_mosaic.version = 11 : i64} {
  func.func @_tconv_matmul_kernel(%arg0: i32, %arg1: i32, %arg2: i32, %arg3: memref<64x4xf32, #tpu.memory_space<vmem>>, %arg4: memref<1x4x256xf32, #tpu.memory_space<vmem>>, %arg5: memref<1x64x256xf32, #tpu.memory_space<vmem>>) attributes {dimension_semantics = [#tpu.dimension_semantics<parallel>, #tpu.dimension_semantics<parallel>, #tpu.dimension_semantics<parallel>], iteration_bounds = array<i64: 2, 1, 1>, scalar_prefetch = 0 : i64, scratch_operands = 0 : i64, tpu.core_type = #tpu.core_type<tc>, window_params = [{transform_indices = @transform_0, window_bounds = array<i64: 64, 4>}, {transform_indices = @transform_1, window_bounds = array<i64: 1, 4, 256>}, {transform_indices = @transform_2, window_bounds = array<i64: 1, 64, 256>}]} {
    %c0 = arith.constant 0 : index
    %c0_0 = arith.constant 0 : index
    %0 = vector.load %arg3[%c0, %c0_0] : memref<64x4xf32, #tpu.memory_space<vmem>>, vector<64x4xf32>
    %c0_1 = arith.constant 0 : index
    %c0_2 = arith.constant 0 : index
    %c0_3 = arith.constant 0 : index
    %1 = vector.load %arg4[%c0_1, %c0_2, %c0_3] : memref<1x4x256xf32, #tpu.memory_space<vmem>>, vector<1x4x256xf32>
    %2 = vector.shape_cast %1 : vector<1x4x256xf32> to vector<4x256xf32>
    %cst = arith.constant dense<0.000000e+00> : vector<64x256xf32>
    %3 = tpu.matmul %0, %2, %cst {dimension_numbers = #tpu.dot_dimension_numbers<[1], [0], [0], [1], [0, 0, 1, 1], [], []>} : vector<64x4xf32>, vector<4x256xf32>, vector<64x256xf32> -> vector<64x256xf32>
    %c0_4 = arith.constant 0 : index
    %c0_5 = arith.constant 0 : index
    %c0_6 = arith.constant 0 : index
    %4 = vector.load %arg5[%c0_4, %c0_5, %c0_6] : memref<1x64x256xf32, #tpu.memory_space<vmem>>, vector<1x64x256xf32>
    %5 = vector.shape_cast %4 : vector<1x64x256xf32> to vector<64x256xf32>
    %6 = vector.shape_cast %3 : vector<64x256xf32> to vector<1x64x256xf32>
    tpu.vector_store %arg5[%c0_4, %c0_5, %c0_6], %6 {strides = array<i32>} : memref<1x64x256xf32, #tpu.memory_space<vmem>>, vector<1x64x256xf32>,
    return
  }
  func.func @transform_0(%arg0: i32, %arg1: i32, %arg2: i32) -> (i32, i32) {
    %c0_i32 = arith.constant 0 : i32
    %c0_i32_0 = arith.constant 0 : i32
    return %arg1, %c0_i32 : i32, i32
  }
  func.func @transform_1(%arg0: i32, %arg1: i32, %arg2: i32) -> (i32, i32, i32) {
    %c0_i32 = arith.constant 0 : i32
    %c0_i32_0 = arith.constant 0 : i32
    return %arg0, %c0_i32, %arg2 : i32, i32, i32
  }
  func.func @transform_2(%arg0: i32, %arg1: i32, %arg2: i32) -> (i32, i32, i32) {
    %c0_i32 = arith.constant 0 : i32
    return %arg0, %arg1, %arg2 : i32, i32, i32
  }
}

</mosaic_0001>

<bundles_post_ra>
// kernel: tconv3d_forward.1
= control target key start
LH: loop header
LB: loop body
LE: loop exit
PB: predicated region body
PF: predicated region fallthrough
CT: control target
= control target key end

     0   :  { %s611_s9 = smov 0   ;;  %s613_s10 = smov 0   ;;  %s698_s0 = inlined_call_operand.vmem [shape: f32[64,4], index: 0, kind: input, shape index: {}]   ;;  %s699_s1 = inlined_call_operand.vmem [shape: f32[2,4,256], index: 1, kind: input, shape index: {}]   ;;  %s700_s2 = inlined_call_operand.vmem [shape: f32[2,64,256], index: 2, kind: output, shape index: {}]  }
   0x1   :  { %s615_s11 = smov 0  }
   0x2 LB: > { %s31_s12 = sadd.s32 1, %s589_s10  ;;  %p524_p0 = scmp.ge.s32.totalorder %s593_s11, 1  ;;  %s593_s11 = sphi %s615_s11, %s12_s11   ;;  %s589_s10 = sphi %s613_s10, %s702_s10   ;;  %s585_s9 = sphi %s611_s9, %s701_s9  }
   0x3   : > { %p33_p1 = scmp.ge.s32.totalorder %s31_s12, 2  ;;  %p153_p2 = scmp.lt.s32.totalorder %s593_s11, 3 }
   0x5   : > { %s704_s12 = smov (%p33_p1, %s31_s12), 0  ;;  %p154_p3 = pnand %p524_p0, %p153_p2 }
   0x6   : > { %p200_p4 = scmp.lt.s32.totalorder (!%p154_p3), %s585_s9, 1  ;;  %v595_v0 = vmov (!%p154_p3), 0.0   ;;  %vm261_vm0 = vcmask (!%p154_p3), 1043456   ;;  %v225_v3 = vld [vmem:[%s698_s0] sm:$0xff] (!%p154_p3)  ;;  %vm236_vm1 = vcmask (!%p154_p3), 31744   ;;  %v226_v5 = vld [vmem:[%s698_s0 + $0x8] sm:$0xff] (!%p154_p3) }
   0x7   : > { %157 = sbr.rel (%p154_p3) target bundleno = 248 (0xf8), region = 28  ;;  %330 = vmatprep.mubr.f32.mxu0 (!%p154_p3), %v595_v0  ;;  %354 = vmatprep.mubr.f32.mxu1 (!%p154_p3), %v595_v0  ;;  %v229_v4 = vld [vmem:[%s698_s0 + $0x20] sm:$0xff] (!%p154_p3)  ;;  %v230_v6 = vld [vmem:[%s698_s0 + $0x28] sm:$0xff] (!%p154_p3)  ;;  %v227_v7 = vld [vmem:[%s698_s0 + $0x10] sm:$0xff] (!%p154_p3) }
   0x8   : > { %v231_v8 = vld [vmem:[%s698_s0 + $0x30] sm:$0xff] (!%p154_p3)  ;;  %v228_v9 = vld [vmem:[%s698_s0 + $0x18] sm:$0xff] (!%p154_p3) }
   0x9   : > { %v232_v10 = vld [vmem:[%s698_s0 + $0x38] sm:$0xff] (!%p154_p3) }
   0xe   : > { %s706_s9 = smov (!%p200_p4, %s585_s9), 1 }
   0xf   : > { %s541_s13 = sshll.u32 %s706_s9, 3  ;;  %s542_s5 = sshll.u32 %s706_s9, 7 }
  0x10   : > { %s207_s16 = scalar_lea.vmem %s699_s1, %s541_s13  ;;  %s671_s8 = scalar_lea.vmem %s700_s2, %s542_s5 }
  0x11   : > { %v233_v1 = vld [vmem:[%s207_s16] sm:$0xff] }
  0x12   : > { %v235_v2 = vcombine.high %v233_v1, %v233_v1 }
  0x14   : > { %529 = vmatprep.subr.msk.mxu0 %vm261_vm0, %v235_v2  ;;  %543 = vmatprep.subr.msk.mxu1 %vm261_vm0, %v235_v2 }
  0x15   : > { %530 = vmatpush1.msk.msra.mxu0 %vm261_vm0, %v233_v1  ;;  %544 = vmatpush1.msk.msra.mxu1 %vm261_vm0, %v233_v1 }
  0x16   : > { %531 = vmatmul.mubr.msk.f32.vlgmr.msra.gmra.mrb[0].mxu0 %vm236_vm1, %v225_v3  ;;  %535 = vmatmul.mubr.msk.f32.vlgmr.msra.gmra.mrb[0].mxu1 %vm236_vm1, %v229_v4 }
  0x17   : > { %336 = vmatprep.mubr.f32.mxu0 %v595_v0  ;;  %360 = vmatprep.mubr.f32.mxu1 %v595_v0 }
  0x1a   : > { %532 = vmatmul.mubr.msk.f32.gmra.mrb[2].mxu0 %vm236_vm1, %v226_v5  ;;  %536 = vmatmul.mubr.msk.f32.gmra.mrb[2].mxu1 %vm236_vm1, %v230_v6 }
  0x1b   : > { %342 = vmatprep.mubr.f32.mxu0 %v595_v0  ;;  %366 = vmatprep.mubr.f32.mxu1 %v595_v0 }
  0x1e   : > { %533 = vmatmul.mubr.msk.f32.gmra.mrb[4].mxu0 %vm236_vm1, %v227_v7  ;;  %537 = vmatmul.mubr.msk.f32.gmra.mrb[4].mxu1 %vm236_vm1, %v231_v8 }
  0x1f   : > { %348 = vmatprep.mubr.f32.mxu0 %v595_v0  ;;  %372 = vmatprep.mubr.f32.mxu1 %v595_v0 }
  0x22   : > { %534 = vmatmul.mubr.msk.f32.gmra.mrb[6].mxu0 %vm236_vm1, %v228_v9  ;;  %538 = vmatmul.mubr.msk.f32.gmra.mrb[6].mxu1 %vm236_vm1, %v232_v10 }
  0xe9   : > { %v332_v11 = vpop.f32.mrb[0].mxu0  ;;  %v356_v12 = vpop.f32.mrb[0].mxu1 }
  0xea   : > { %379 = vst [vmem:[%s671_s8] sm:$0xff] %v332_v11  ;;  %387 = vst [vmem:[%s671_s8 + $0x40] sm:$0xff] %v356_v12  ;;  %v334_v13 = vpop.f32.mrb[1].mxu0  ;;  %v358_v14 = vpop.f32.mrb[1].mxu1 }
  0xeb   : > { %380 = vst [vmem:[%s671_s8 + $0x8] sm:$0xff] %v334_v13  ;;  %388 = vst [vmem:[%s671_s8 + $0x48] sm:$0xff] %v358_v14 }
  0xed   : > { %v338_v15 = vpop.f32.mrb[2].mxu0  ;;  %v362_v16 = vpop.f32.mrb[2].mxu1 }
  0xee   : > { %381 = vst [vmem:[%s671_s8 + $0x10] sm:$0xff] %v338_v15  ;;  %389 = vst [vmem:[%s671_s8 + $0x50] sm:$0xff] %v362_v16  ;;  %v340_v17 = vpop.f32.mrb[3].mxu0  ;;  %v364_v18 = vpop.f32.mrb[3].mxu1 }
  0xef   : > { %382 = vst [vmem:[%s671_s8 + $0x18] sm:$0xff] %v340_v17  ;;  %390 = vst [vmem:[%s671_s8 + $0x58] sm:$0xff] %v364_v18 }
  0xf1   : > { %v344_v19 = vpop.f32.mrb[4].mxu0  ;;  %v368_v20 = vpop.f32.mrb[4].mxu1 }
  0xf2   : > { %383 = vst [vmem:[%s671_s8 + $0x20] sm:$0xff] %v344_v19  ;;  %391 = vst [vmem:[%s671_s8 + $0x60] sm:$0xff] %v368_v20  ;;  %v346_v21 = vpop.f32.mrb[5].mxu0  ;;  %v370_v22 = vpop.f32.mrb[5].mxu1 }
  0xf3   : > { %384 = vst [vmem:[%s671_s8 + $0x28] sm:$0xff] %v346_v21  ;;  %392 = vst [vmem:[%s671_s8 + $0x68] sm:$0xff] %v370_v22 }
  0xf5   : > { %v350_v23 = vpop.f32.mrb[6].mxu0  ;;  %v374_v24 = vpop.f32.mrb[6].mxu1 }
  0xf6   : > { %385 = vst [vmem:[%s671_s8 + $0x30] sm:$0xff] %v350_v23  ;;  %393 = vst [vmem:[%s671_s8 + $0x70] sm:$0xff] %v374_v24  ;;  %v352_v25 = vpop.f32.mrb[7].mxu0  ;;  %v376_v26 = vpop.f32.mrb[7].mxu1 }
  0xf7   : > { %386 = vst [vmem:[%s671_s8 + $0x38] sm:$0xff] %v352_v25  ;;  %394 = vst [vmem:[%s671_s8 + $0x78] sm:$0xff] %v376_v26 }
  0xf8 PF: > { %s12_s11 = sadd.s32 1, %s593_s11   ;;  %s701_s9 = smov %s589_s10 }
  0xf9   : > { %p9_p5 = scmp.ge.s32.totalorder %s12_s11, 4   ;;  %s702_s10 = smov %s704_s12 }
  0xfb   :  { %11 = sbr.rel (!%p9_p5) target bundleno = 2 (0x2), region = 61 }

</bundles_post_ra>
